<compile_context>
chip_gen: v6e
topology: v6e:2x2x1
jax: 0.10.0
libtpu: 0.0.40
codegen_flags: <defaults>
</compile_context>

<pallas_src>
import functools
import math

import jax
import jax.numpy as jnp
from jax import lax
from jax.experimental import pallas as pl
from jax.experimental.pallas import tpu as pltpu


def _attention_kernel(q_ref, k_ref, v_ref, o_ref, acc_ref, *, scale,
                      exp_dtype, mxu_precision):
    kb = pl.program_id(1)

    @pl.when(kb == 0)
    def _():
        acc_ref[...] = jnp.zeros_like(acc_ref)

    q = q_ref[...]                       # (Lq, Dp), native dtype, resident
    k = k_ref[...] * scale               # fold scale into the key tile
    v = v_ref[...]                       # (block_k, Dp)

    # Scores for this key tile: (Lq, block_k); contract the feature dim on the
    # MXU with f32 accumulation.
    s = lax.dot_general(
        q, k, (((1,), (1,)), ((), ())),
        preferred_element_type=jnp.float32,
        precision=mxu_precision,
    )

    # torch.softmax(att, dim=1) == softmax over the QUERY axis (axis 0 here).
    # The full query axis is present in this tile, so each key column's
    # normalization is complete -- no cross-tile rescale needed.
    m = jnp.max(s, axis=0, keepdims=True)
    e = jnp.exp((s - m).astype(exp_dtype))
    denom = jnp.sum(e.astype(jnp.float32), axis=0, keepdims=True)  # >= 1
    sm = (e * (1.0 / denom)).astype(v.dtype)   # exact reciprocal of a row

    # Accumulate this key tile's contribution: (Lq, block_k) @ (block_k, Dp).
    acc_ref[...] += jnp.dot(
        sm, v, preferred_element_type=jnp.float32, precision=mxu_precision
    )

    @pl.when(kb == pl.num_programs(1) - 1)
    def _():
        o_ref[...] = acc_ref[...].astype(o_ref.dtype)


def _round_up(x, m):
    return (x + m - 1) // m * m


def _pick_block_k(l_k):
    """Key-tile size: full tile for small L, lane-dense 256 otherwise."""
    if l_k <= 256:
        return l_k          # block == full array dim is always layout-legal
    return 256              # multiple of 128; key axis padded to a multiple


def _vmem_capacity_bytes():
    try:
        return int(pltpu.get_tpu_info().vmem_capacity_bytes)
    except Exception:
        return 64 * 1024 * 1024     # conservative (v7x per-core)


def _is_v5():
    try:
        return "v5" in jax.devices()[0].device_kind.lower()
    except Exception:
        return False


def attention(q, k, v, embed_dim):
    """q, k, v: (B, L, D) arrays.  Returns (B, L, D)."""
    B, Lq, D = q.shape
    assert k.shape == (B, Lq, D) and v.shape == (B, Lq, D)
    scale = 1.0 / math.sqrt(embed_dim)
    in_dtype = jnp.dtype(q.dtype)

    # --- lane-dense padding (wrapper-side, zeros; mathematically inert) -----
    D_pad = _round_up(D, 128)
    block_k = _pick_block_k(Lq)
    Lk_pad = _round_up(Lq, block_k)
    num_kb = Lk_pad // block_k

    qp = q if D_pad == D else jnp.pad(q, ((0, 0), (0, 0), (0, D_pad - D)))
    if D_pad == D and Lk_pad == Lq:
        kp, vp = k, v
    else:
        kp = jnp.pad(k, ((0, 0), (0, Lk_pad - Lq), (0, D_pad - D)))
        vp = jnp.pad(v, ((0, 0), (0, Lk_pad - Lq), (0, D_pad - D)))

    # --- generation-gated softmax exp dtype & MXU precision -----------------
    if in_dtype == jnp.dtype(jnp.bfloat16) and not _is_v5():
        exp_dtype = jnp.bfloat16          # EUP-bound relief on v6e/v7x
    else:
        exp_dtype = jnp.float32
    mxu_precision = (
        lax.Precision.HIGHEST if in_dtype == jnp.dtype(jnp.float32)
        else lax.Precision.DEFAULT
    )

    kernel = functools.partial(
        _attention_kernel, scale=scale, exp_dtype=exp_dtype,
        mxu_precision=mxu_precision)

    q_spec = pl.BlockSpec((pl.Squeezed(), Lq, D_pad), lambda b, kb: (b, 0, 0))
    kv_spec = pl.BlockSpec((pl.Squeezed(), block_k, D_pad),
                           lambda b, kb: (b, kb, 0))
    out_spec = pl.BlockSpec((pl.Squeezed(), Lq, D_pad), lambda b, kb: (b, 0, 0))

    # --- VMEM budget (generation aware) -------------------------------------
    elt = in_dtype.itemsize
    est = (
        2 * Lq * D_pad * elt            # q (double-buffered)
        + 4 * block_k * D_pad * elt     # k, v tiles (double-buffered)
        + 2 * Lq * D_pad * elt          # out (double-buffered)
        + Lq * D_pad * 4                # f32 accumulator
        + 2 * Lq * block_k * 4          # score / exp intermediates
    )
    cap = int(0.625 * _vmem_capacity_bytes())   # ~40 MiB on v7x, ~80 on v5e/v6e
    vmem_limit = int(min(max(2 * est, 16 * 1024 * 1024), cap))

    cost = pl.CostEstimate(
        flops=4 * B * Lq * Lk_pad * D_pad,     # two (Lq, Lk, D) matmuls
        transcendentals=B * Lq * Lk_pad,       # exp over the score matrix
        bytes_accessed=(B * Lq * D_pad + 2 * B * Lk_pad * D_pad
                        + B * Lq * D_pad) * elt,
    )

    out = pl.pallas_call(
        kernel,
        out_shape=jax.ShapeDtypeStruct((B, Lq, D_pad), q.dtype),
        grid_spec=pltpu.PrefetchScalarGridSpec(
            num_scalar_prefetch=0,
            grid=(B, num_kb),
            in_specs=[q_spec, kv_spec, kv_spec],
            out_specs=out_spec,
            scratch_shapes=[pltpu.VMEM((Lq, D_pad), jnp.float32)],
        ),
        compiler_params=pltpu.CompilerParams(
            dimension_semantics=("parallel", "arbitrary"),
            vmem_limit_bytes=vmem_limit,
        ),
        cost_estimate=cost,
    )(qp, kp, vp)

    if D_pad != D:
        out = out[..., :D]
    return out


def _reference(q, k, v, embed_dim):
    energy = jnp.einsum("bqd,bkd->bqk", q, k,
                        precision=lax.Precision.HIGHEST)
    att = energy / math.sqrt(embed_dim)
    sm = jax.nn.softmax(att, axis=1)      # torch dim=1 == query axis
    return jnp.einsum("bqk,bkd->bqd", sm, v,
                      precision=lax.Precision.HIGHEST)


if __name__ == "__main__":
    B, L, D = 2, 8, 32          # batch=2, seq=8, hidden(embed_dim)=32
    embed_dim = D

    key = jax.random.PRNGKey(0)
    kq, kk, kv = jax.random.split(key, 3)
    q = jax.random.normal(kq, (B, L, D), dtype=jnp.float32)
    k = jax.random.normal(kk, (B, L, D), dtype=jnp.float32)
    v = jax.random.normal(kv, (B, L, D), dtype=jnp.float32)

    out = attention(q, k, v, embed_dim)
    jax.block_until_ready(out)

    ref = _reference(q, k, v, embed_dim)
    assert out.shape == (B, L, D)
    err = float(jnp.max(jnp.abs(out - ref)))
    assert jnp.allclose(out, ref, atol=2e-3, rtol=2e-3), err

    print("KERNEL_OK")
</pallas_src>

<mosaic_0001>
module attributes {stable_mosaic.version = 11 : i64} {
  func.func @_attention_kernel(%arg0: i32, %arg1: i32, %arg2: memref<1x8x128xf32, #tpu.memory_space<vmem>>, %arg3: memref<1x8x128xf32, #tpu.memory_space<vmem>>, %arg4: memref<1x8x128xf32, #tpu.memory_space<vmem>>, %arg5: memref<1x8x128xf32, #tpu.memory_space<vmem>>, %arg6: memref<8x128xf32, #tpu.memory_space<vmem>>) attributes {dimension_semantics = [#tpu.dimension_semantics<parallel>, #tpu.dimension_semantics<arbitrary>], iteration_bounds = array<i64: 2, 1>, scalar_prefetch = 0 : i64, scratch_operands = 1 : i64, tpu.core_type = #tpu.core_type<tc>, window_params = [{transform_indices = @transform_0, window_bounds = array<i64: 1, 8, 128>}, {transform_indices = @transform_1, window_bounds = array<i64: 1, 8, 128>}, {transform_indices = @transform_2, window_bounds = array<i64: 1, 8, 128>}, {transform_indices = @transform_3, window_bounds = array<i64: 1, 8, 128>}]} {
    %c0_i32 = arith.constant 0 : i32
    %0 = arith.cmpi eq, %arg1, %c0_i32 : i32
    %1 = arith.extui %0 : i1 to i32
    %c0_i32_0 = arith.constant 0 : i32
    %2 = arith.cmpi ne, %1, %c0_i32_0 : i32
    scf.if %2 {
      %cst_20 = arith.constant 0.000000e+00 : f32
      %30 = vector.broadcast %cst_20 : f32 to vector<8x128xf32>
      %c0_21 = arith.constant 0 : index
      %c0_22 = arith.constant 0 : index
      %31 = vector.load %arg6[%c0_21, %c0_22] : memref<8x128xf32, #tpu.memory_space<vmem>>, vector<8x128xf32>
      tpu.vector_store %arg6[%c0_21, %c0_22], %30 {strides = array<i32>} : memref<8x128xf32, #tpu.memory_space<vmem>>, vector<8x128xf32>,
    } else {
    }
    %c0 = arith.constant 0 : index
    %c0_1 = arith.constant 0 : index
    %c0_2 = arith.constant 0 : index
    %3 = vector.load %arg2[%c0, %c0_1, %c0_2] : memref<1x8x128xf32, #tpu.memory_space<vmem>>, vector<1x8x128xf32>
    %4 = vector.shape_cast %3 : vector<1x8x128xf32> to vector<8x128xf32>
    %c0_3 = arith.constant 0 : index
    %c0_4 = arith.constant 0 : index
    %c0_5 = arith.constant 0 : index
    %5 = vector.load %arg3[%c0_3, %c0_4, %c0_5] : memref<1x8x128xf32, #tpu.memory_space<vmem>>, vector<1x8x128xf32>
    %6 = vector.shape_cast %5 : vector<1x8x128xf32> to vector<8x128xf32>
    %cst = arith.constant 0.176776692 : f32
    %7 = vector.broadcast %cst : f32 to vector<8x128xf32>
    %8 = arith.mulf %6, %7 : vector<8x128xf32>
    %c0_6 = arith.constant 0 : index
    %c0_7 = arith.constant 0 : index
    %c0_8 = arith.constant 0 : index
    %9 = vector.load %arg4[%c0_6, %c0_7, %c0_8] : memref<1x8x128xf32, #tpu.memory_space<vmem>>, vector<1x8x128xf32>
    %10 = vector.shape_cast %9 : vector<1x8x128xf32> to vector<8x128xf32>
    %cst_9 = arith.constant dense<0.000000e+00> : vector<8x8xf32>
    %11 = tpu.matmul %4, %8, %cst_9 {dimension_numbers = #tpu.dot_dimension_numbers<[1], [1], [0], [0], [0, 0, 1, 0], [], []>, precision = #tpu.contract_precision<fp32>} : vector<8x128xf32>, vector<8x128xf32>, vector<8x8xf32> -> vector<8x8xf32>
    %cst_10 = arith.constant dense<0xFF800000> : vector<8xf32>
    %12 = vector.multi_reduction <maximumf>, %11, %cst_10 [0] : vector<8x8xf32> to vector<8xf32>
    %13 = vector.shape_cast %12 : vector<8xf32> to vector<1x8xf32>
    %14 = vector.broadcast %13 : vector<1x8xf32> to vector<8x8xf32>
    %15 = arith.subf %11, %14 : vector<8x8xf32>
    %16 = math.exp %15 : vector<8x8xf32>
    %cst_11 = arith.constant dense<0.000000e+00> : vector<8xf32>
    %17 = vector.multi_reduction <add>, %16, %cst_11 [0] : vector<8x8xf32> to vector<8xf32>
    %18 = vector.shape_cast %17 : vector<8xf32> to vector<1x8xf32>
    %cst_12 = arith.constant 1.000000e+00 : f32
    %19 = vector.broadcast %cst_12 : f32 to vector<1x8xf32>
    %20 = arith.divf %19, %18 : vector<1x8xf32>
    %21 = vector.broadcast %20 : vector<1x8xf32> to vector<8x8xf32>
    %22 = arith.mulf %16, %21 : vector<8x8xf32>
    %c0_13 = arith.constant 0 : index
    %c0_14 = arith.constant 0 : index
    %23 = vector.load %arg6[%c0_13, %c0_14] : memref<8x128xf32, #tpu.memory_space<vmem>>, vector<8x128xf32>
    %cst_15 = arith.constant dense<0.000000e+00> : vector<8x128xf32>
    %24 = tpu.matmul %22, %10, %cst_15 {dimension_numbers = #tpu.dot_dimension_numbers<[1], [0], [0], [1], [0, 0, 1, 1], [], []>, precision = #tpu.contract_precision<fp32>} : vector<8x8xf32>, vector<8x128xf32>, vector<8x128xf32> -> vector<8x128xf32>
    %25 = arith.addf %23, %24 : vector<8x128xf32>
    %c0_16 = arith.constant 0 : index
    %c0_17 = arith.constant 0 : index
    %26 = vector.load %arg6[%c0_16, %c0_17] : memref<8x128xf32, #tpu.memory_space<vmem>>, vector<8x128xf32>
    tpu.vector_store %arg6[%c0_16, %c0_17], %25 {strides = array<i32>} : memref<8x128xf32, #tpu.memory_space<vmem>>, vector<8x128xf32>,
    %c0_i32_18 = arith.constant 0 : i32
    %27 = arith.cmpi eq, %arg1, %c0_i32_18 : i32
    %28 = arith.extui %27 : i1 to i32
    %c0_i32_19 = arith.constant 0 : i32
    %29 = arith.cmpi ne, %28, %c0_i32_19 : i32
    scf.if %29 {
      %c0_20 = arith.constant 0 : index
      %c0_21 = arith.constant 0 : index
      %30 = vector.load %arg6[%c0_20, %c0_21] : memref<8x128xf32, #tpu.memory_space<vmem>>, vector<8x128xf32>
      %c0_22 = arith.constant 0 : index
      %c0_23 = arith.constant 0 : index
      %c0_24 = arith.constant 0 : index
      %31 = vector.load %arg5[%c0_22, %c0_23, %c0_24] : memref<1x8x128xf32, #tpu.memory_space<vmem>>, vector<1x8x128xf32>
      %32 = vector.shape_cast %31 : vector<1x8x128xf32> to vector<8x128xf32>
      %33 = vector.shape_cast %30 : vector<8x128xf32> to vector<1x8x128xf32>
      tpu.vector_store %arg5[%c0_22, %c0_23, %c0_24], %33 {strides = array<i32>} : memref<1x8x128xf32, #tpu.memory_space<vmem>>, vector<1x8x128xf32>,
    } else {
    }
    return
  }
  func.func @transform_0(%arg0: i32, %arg1: i32) -> (i32, i32, i32) {
    %c0_i32 = arith.constant 0 : i32
    %c0_i32_0 = arith.constant 0 : i32
    %c0_i32_1 = arith.constant 0 : i32
    return %arg0, %c0_i32, %c0_i32_0 : i32, i32, i32
  }
  func.func @transform_1(%arg0: i32, %arg1: i32) -> (i32, i32, i32) {
    %c0_i32 = arith.constant 0 : i32
    %c0_i32_0 = arith.constant 0 : i32
    return %arg0, %arg1, %c0_i32 : i32, i32, i32
  }
  func.func @transform_2(%arg0: i32, %arg1: i32) -> (i32, i32, i32) {
    %c0_i32 = arith.constant 0 : i32
    %c0_i32_0 = arith.constant 0 : i32
    return %arg0, %arg1, %c0_i32 : i32, i32, i32
  }
  func.func @transform_3(%arg0: i32, %arg1: i32) -> (i32, i32, i32) {
    %c0_i32 = arith.constant 0 : i32
    %c0_i32_0 = arith.constant 0 : i32
    %c0_i32_1 = arith.constant 0 : i32
    return %arg0, %c0_i32, %c0_i32_0 : i32, i32, i32
  }
}

</mosaic_0001>

<bundles_post_ra>
// kernel: tpu_custom_call.1
= control target key start
LH: loop header
LB: loop body
LE: loop exit
PB: predicated region body
PF: predicated region fallthrough
CT: control target
= control target key end

     0   :  { %s1964_s0 = inlined_call_operand.hbm [shape: f32[2,8,128], index: 0, kind: input, shape index: {}]   ;;  %s1965_s1 = inlined_call_operand.hbm [shape: f32[2,8,128], index: 1, kind: input, shape index: {}]   ;;  %s1966_s2 = inlined_call_operand.hbm [shape: f32[2,8,128], index: 2, kind: input, shape index: {}]   ;;  %s1967_s3 = inlined_call_operand.hbm [shape: f32[2,8,128], index: 3, kind: output, shape index: {}]  }
   0x1   :  { %1971 = sst [smem:[#allocation15_spill]] %s1965_s1 }
   0x2   :  { %8 = vsyncpa [#allocation4], 0 }
   0x3   :  { %10 = vsyncpa [#allocation4 + $0x1], 0 }
   0x4   :  { %11 = vsyncpa [#allocation7], 0 }
   0x5   :  { %13 = vsyncpa [#allocation7 + $0x1], 0 }
   0x6   :  { %14 = vsyncpa [#allocation5], 0 }
   0x7   :  { %16 = vsyncpa [#allocation5 + $0x1], 0  ;;  %s1722_s12 = smov 0   ;;  %s1724_s13 = smov 0  }
   0x8   :  { %s1726_s14 = smov 0   ;;  %s1728_s15 = smov 0  }
   0x9   :  { %s1730_s16 = smov 0   ;;  %s1732_s17 = smov 0  }
   0xa LB: > { %1972 = sst [smem:[#allocation13_spill]] %s1690_s16  ;;  %s1753_s18 = sadd.s32 4294967295, %s1694_s17   ;;  %s1694_s17 = sphi %s1732_s17, %s22_s17   ;;  %s1690_s16 = sphi %s1730_s16, %s1984_s16   ;;  %s1686_s15 = sphi %s1728_s15, %s1983_s15   ;;  %s1682_s14 = sphi %s1726_s14, %s1987_s14   ;;  %s1678_s13 = sphi %s1724_s13, %s1986_s13   ;;  %s1674_s12 = sphi %s1722_s12, %s1985_s12  }
   0xb   : > { %s1346_s19 = sadd.s32 4294967294, %s1694_s17   ;;  %s34_s20 = sadd.s32 1, %s1690_s16 }
   0xc   : > { %s41_s21 = sadd.s32 1, %s1682_s14  ;;  %p36_p0 = scmp.ge.s32.totalorder %s34_s20, 2 }
   0xd   : > { %p48_p1 = scmp.ne.s32.totalorder %s1682_s14, %s1678_s13  ;;  %p49_p2 = scmp.eq.s32.totalorder %s1694_s17, 0 }
   0xe   : > { %p54_p3 = scmp.ne.s32.totalorder %s1678_s13, %s1674_s12  ;;  %s1989_s20 = smov (%p36_p0, %s34_s20), 0 }
   0xf   : > { %1973 = sst [smem:[#allocation14_spill]] %s1989_s20  ;;  %p1765_p4 = por %p49_p2, %p48_p1 }
  0x10   : > { %p55_p5 = scmp.eq.s32.totalorder %s1753_s18, 0  ;;  %s38_s23 = ssub.s32 %s1690_s16, %s1989_s20 }
  0x11   : > { %p134_p6 = scmp.eq.s32.totalorder %s1753_s18, 1  ;;  %p39_p7 = scmp.eq.s32.totalorder %s38_s23, 0 }
  0x12   : > { %p1773_p8 = por %p55_p5, %p54_p3  ;;  %p140_p10 = scmp.eq.s32.totalorder %s1346_s19, 1 }
  0x13   : > { %p1777_p9 = por %p134_p6, %p48_p1  ;;  %p1470_p13 = scmp.lt.s32.totalorder %s1694_s17, 2 }
  0x14   : > { %s1782_s26 = scalar_select %p39_p7, %s1682_s14, %s41_s21  }
  0x15   : > { %p1784_p11 = por %p140_p10, %p54_p3  ;;  %s1968_s28 = sand.u32 1, %s1682_s14  }
  0x16   : > { %s1793_s29 = sshll.u32 %s1968_s28, 3  ;;  %s1796_s30 = sshll.u32 %s1690_s16, 7 }
  0x17   : > { %p1800_p0 = pnand %p1470_p13, %p1765_p4  ;;  %s178_s5 = sand.u32 1, %s1694_s17  }
  0x18   : > { %s1979_s1 = sld [smem:[#allocation15_spill]]  ;;  %s182_s9 = scalar_lea.vmem [#allocation6], %s1793_s29 }
  0x19   : > { %s190_s10 = sshll.u32 %s182_s9, 4  ;;  %p1355_p1 = scmp.ge.s32.totalorder %s1694_s17, 1  ;;  %s191_s10 = int_to_ptr.vmem [resolvable:$true] %s190_s10 }
  0x1a   : > { %p214_p2 = scmp.lt.s32.totalorder %s1694_s17, 3  ;;  %s1812_s11 = scalar_lea.sflag [#allocation7], %s178_s5 }
  0x1b   : > { %p1528_p3 = pneg %p1800_p0  ;;  %s1539_s19 = scalar_lea.vmem %s191_s10, 128 }
  0x1c   : > { %p1540_p4 = scmp.ne.s32.totalorder %s191_s10, %s1539_s19  ;;  %s1696_s21 = smov [#allocation6]  }
  0x1d   : > { %s1544_s22 = sshll.u32 %s1696_s21, 4  ;;  %s1545_s22 = int_to_ptr.vmem [resolvable:$false] %s1544_s22 }
  0x1e   : > { %s188_s8 = scalar_lea.hbm %s1979_s1, %s1796_s30  ;;  %p1542_p5 = pnand %p1540_p4, %p1528_p3 }
  0x1f   : > { %s1546_s23 = scalar_lea.vmem %s1545_s22, 256  ;;  %p1547_p7 = scmp.lt.s32.totalorder %s191_s10, %s1545_s22 }
  0x20   : > { %p1543_p6 = pneg %p1542_p5  ;;  %p1548_p10 = scmp.lt.s32.totalorder %s1546_s23, %s1539_s19 }
  0x22   : > { %p1549_p13 = por %p1548_p10, %p1547_p7 }
  0x24   : > { %p1550_p12 = pnand %p1549_p13, %p1543_p6 }
  0x26   : > { %1553 = shalt.err (!%p1550_p12)
}
  0x27   : > { %1462 = dma.hbm_to_vmem [thread:$0]  (!%p1800_p0), %s188_s8, 128, %s191_s10, %s1812_s11  }
  0x28   : > { %p1826_p4 = pnand %p1355_p1, %p214_p2  ;;  %s169_s9 = scalar_lea.hbm %s1964_s0, %s1796_s30 }
  0x29   : > { %s164_s19 = scalar_lea.vmem [#allocation3], %s1793_s29  ;;  %s207_s28 = scalar_lea.hbm %s1966_s2, %s1796_s30 }
  0x2a   : > { %s171_s21 = sshll.u32 %s164_s19, 4  ;;  %s1981_s1 = sand.u32 1, %s1682_s14   ;;  %s172_s21 = int_to_ptr.vmem [resolvable:$true] %s171_s21 }
  0x2b   : > { %s161_s20 = scalar_lea.sflag [#allocation4], %s1981_s1  ;;  %s1567_s8 = scalar_lea.vmem %s172_s21, 128 }
  0x2c   : > { %p1568_p12 = scmp.ne.s32.totalorder %s172_s21, %s1567_s8  ;;  %s1697_s10 = smov [#allocation3]  }
  0x2d   : > { %s1572_s16 = sshll.u32 %s1697_s10, 4  ;;  %s1573_s16 = int_to_ptr.vmem [resolvable:$false] %s1572_s16 }
  0x2e   : > { %p1570_p1 = pnand %p1568_p12, %p1528_p3  ;;  %s1574_s6 = scalar_lea.vmem %s1573_s16, 256 }
  0x2f   : > { %p1575_p5 = scmp.lt.s32.totalorder %s172_s21, %s1573_s16  ;;  %p1576_p6 = scmp.lt.s32.totalorder %s1574_s6, %s1567_s8 }
  0x30   : > { %p1571_p2 = pneg %p1570_p1 }
  0x31   : > { %p1577_p7 = por %p1576_p6, %p1575_p5 }
  0x33   : > { %p1578_p10 = pnand %p1577_p7, %p1571_p2 }
  0x35   : > { %1581 = shalt.err (!%p1578_p10)
}
  0x36   : > { %1459 = dma.hbm_to_vmem [thread:$0]  (!%p1800_p0), %s169_s9, 128, %s172_s21, %s161_s20  }
  0x37   : > { %s201_s1 = scalar_lea.vmem [#allocation8], %s1793_s29  ;;  %s1698_s22 = smov [#allocation8]  }
  0x38   : > { %s209_s7 = sshll.u32 %s201_s1, 4  ;;  %s1600_s16 = sshll.u32 %s1698_s22, 4  ;;  %s210_s7 = int_to_ptr.vmem [resolvable:$true] %s209_s7  ;;  %s1601_s16 = int_to_ptr.vmem [resolvable:$false] %s1600_s16 }
  0x39   : > { %s1595_s19 = scalar_lea.vmem %s210_s7, 128  ;;  %s1602_s23 = scalar_lea.vmem %s1601_s16, 256 }
  0x3a   : > { %p1596_p13 = scmp.ne.s32.totalorder %s210_s7, %s1595_s19  ;;  %p1603_p2 = scmp.lt.s32.totalorder %s210_s7, %s1601_s16 }
  0x3b   : > { %p1604_p5 = scmp.lt.s32.totalorder %s1602_s23, %s1595_s19 }
  0x3c   : > { %p1598_p12 = pnand %p1596_p13, %p1528_p3 }
  0x3d   : > { %p1605_p6 = por %p1604_p5, %p1603_p2 }
  0x3e   : > { %p1599_p1 = pneg %p1598_p12 }
  0x40   : > { %p1606_p7 = pnand %p1605_p6, %p1599_p1 }
  0x42   : > { %1609 = shalt.err (!%p1606_p7)
}
  0x43   : > { %1465 = dma.hbm_to_vmem [thread:$0]  (!%p1800_p0), %s207_s28, 128, %s210_s7, %s1812_s11  }
  0x44   : > { %218 = sbr.rel (%p1826_p4) target bundleno = 585 (0x249), region = 32  ;;  %s1861_s9 = sand.u32 (!%p1826_p4), 1, %s1678_s13  }
  0x45   : > { %s1864_s21 = sshll.u32 (!%p1826_p4), %s1861_s9, 3  ;;  %s221_s4 = scalar_lea.sflag (!%p1826_p4), [#allocation4], %s1861_s9 }
  0x46   : > { %s224_s8 = scalar_lea.vmem (!%p1826_p4), [#allocation3], %s1864_s21 }
  0x49   : > { %1661 = dma.done.wait (%p1773_p8), %s221_s4, 128  }
  0x4a   : > { %1663 = vsyncadd (%p1773_p8), %s221_s4, 4294967168  ;;  %s229_s28 = sand.u32 1, %s1753_s18   ;;  %s233_s11 = scalar_lea.vmem [#allocation6], %s1864_s21 }
  0x4b   : > { %s230_s30 = scalar_lea.sflag [#allocation7], %s229_s28 }
  0x4c   : > { %1665 = dma.done.wait (%p1773_p8), %s230_s30, 256  }
  0x4d   : > { %1667 = vsyncadd (%p1773_p8), %s230_s30, 4294967040  ;;  %v1699_v0 = vmov 0.0   ;;  %vm1700_vm0 = vmmov 0   ;;  %v281_v1 = vld [vmem:[%s233_s11] sm:$0xff]  ;;  %v280_v2 = vld [vmem:[%s224_s8] sm:$0xff]  ;;  %s242_s18 = scalar_lea.vmem [#allocation8], %s1864_s21 }
  0x4e   : > { %1388 = vmatprep.subr.mxu0 %v1699_v0  ;;  %1390 = vmatprep.mubr.msk.f32.mxu0 %vm1700_vm0, %v1699_v0  ;;  %v282_v3 = vmul.f32 0.17677669, %v281_v1  ;;  %v350_v4 = vand.u32 4294901760, %v280_v2  ;;  %v283_v14 = vld [vmem:[%s242_s18] sm:$0xff]  ;;  %vm730_vm1 = vcmask 64512   ;;  %s1361_s24 = sshll.u32 %s1686_s15, 7 }
  0x4f   : > { %1393 = vmatprep.subr.mxu1 %v1699_v0  ;;  %1395 = vmatprep.mubr.msk.f32.mxu1 %vm1700_vm0, %v1699_v0  ;;  %v786_v15 = vand.u32 4294901760, %v283_v14  ;;  %s274_s5 = scalar_lea.vmem [#allocation9], %s1864_s21  ;;  %s1220_s7 = scalar_lea.hbm %s1967_s3, %s1361_s24 }
  0x50   : > { %v315_v5 = vand.u32 4294901760, %v282_v3  ;;  %v351_v6 = vsub.f32 %v280_v2, %v350_v4  ;;  %s1222_s10 = sshll.u32 %s274_s5, 4  ;;  %s1209_s19 = scalar_lea.sflag [#allocation5], %s1861_s9  ;;  %s1223_s10 = int_to_ptr.vmem [resolvable:$true] %s1222_s10 }
  0x51   : > { %v1903_v16 = vsub.f32 %v283_v14, %v786_v15  ;;  %s1610_s22 = scalar_lea.vmem %s1223_s10, 128  ;;  %s1701_s16 = smov [#allocation9]  }
  0x52   : > { %1389 = vmatpush3.xpose.msra.mxu0 %v315_v5  ;;  %v352_v7 = vand.u32 4294901760, %v351_v6  ;;  %v392_v8 = vsub.f32 %v282_v3, %v315_v5  ;;  %p1611_p8 = scmp.ne.s32.totalorder %s1223_s10, %s1610_s22  ;;  %s1614_s23 = sshll.u32 %s1701_s16, 4  ;;  %s1615_s23 = int_to_ptr.vmem [resolvable:$false] %s1614_s23 }
  0x53   : > { %1398 = vmatprep.subr.mxu0 %v1699_v0  ;;  %v864_v17 = vand.u32 4294901760, %v1903_v16  ;;  %s1616_s15 = scalar_lea.vmem %s1615_s23, 256  ;;  %p1617_p4 = scmp.lt.s32.totalorder %s1223_s10, %s1615_s23 }
  0x54   : > { %v353_v9 = vsub.f32 %v351_v6, %v352_v7  ;;  %v393_v10 = vand.u32 4294901760, %v392_v8  ;;  %p1612_p0 = pnand %p1611_p8, %p1777_p9  ;;  %p1618_p10 = scmp.lt.s32.totalorder %s1616_s15, %s1610_s22 }
  0x55   : > { %v865_v18 = vsub.f32 %v1903_v16, %v864_v17 }
  0x56   : > { %v354_v11 = vand.u32 4294901760, %v353_v9  ;;  %v394_v12 = vsub.f32 %v392_v8, %v393_v10  ;;  %p1613_p3 = pneg %p1612_p0  ;;  %p1619_p13 = por %p1618_p10, %p1617_p4 }
  0x57   : > { %v866_v19 = vand.u32 4294901760, %v865_v18 }
  0x58   : > { %1391 = vmatmul.mubr.f32.vlgmr.msra.gmra.mxu0 %v354_v11  ;;  %v395_v13 = vand.u32 4294901760, %v394_v12  ;;  %p1620_p12 = pnand %p1619_p13, %p1613_p3 }
  0x59   : > { %1399 = vmatpush3.xpose.msra.mxu0 %v392_v8  ;;  %1400 = vmatprep.mubr.msk.f32.mxu0 %vm1700_vm0, %v1699_v0 }
  0x5a   : > { %1394 = vmatpush3.xpose.msra.mxu1 %v395_v13  ;;  %1408 = vmatprep.subr.mxu0 %v1699_v0 }
  0x5b   : > { %1403 = vmatprep.subr.mxu1 %v1699_v0 }
  0x5c   : > { %1401 = vmatmul.mubr.f32.vlgmr.msra.gmra.mxu0 %v351_v6 }
  0x5d   : > { %1396 = vmatmul.mubr.f32.vlgmr.msra.gmra.mxu1 %v350_v4  ;;  %1409 = vmatpush3.xpose.msra.mxu0 %v393_v10 }
  0x5e   : > { %1404 = vmatpush3.xpose.msra.mxu1 %v315_v5  ;;  %1405 = vmatprep.mubr.msk.f32.mxu1 %vm1700_vm0, %v1699_v0 }
  0x5f   : > { %1410 = vmatprep.mubr.msk.f32.mxu0 %vm1700_vm0, %v1699_v0  ;;  %1413 = vmatprep.subr.mxu1 %v1699_v0 }
  0x60   : > { %1411 = vmatmul.mubr.f32.vlgmr.msra.gmra.mxu0 %v350_v4  ;;  %1418 = vmatprep.subr.mxu0 %v1699_v0 }
  0x61   : > { %1406 = vmatmul.mubr.f32.vlgmr.msra.gmra.mxu1 %v352_v7  ;;  %1420 = vmatprep.mubr.msk.f32.mxu0 %vm1700_vm0, %v1699_v0 }
  0x62   : > { %1414 = vmatpush3.xpose.msra.mxu1 %v315_v5  ;;  %1415 = vmatprep.mubr.msk.f32.mxu1 %vm1700_vm0, %v1699_v0 }
  0x63   : > { %1423 = vmatprep.subr.mxu1 %v1699_v0  ;;  %1419 = vmatpush3.msra.mxu0 %v786_v15 }
  0x64   : > { %1428 = vmatprep.subr.mxu0 %v1699_v0 }
  0x65   : > { %1416 = vmatmul.mubr.f32.vlgmr.msra.gmra.mxu1 %v350_v4 }
  0x66   : > { %1425 = vmatprep.mubr.msk.f32.mxu1 %vm1700_vm0, %v1699_v0  ;;  %1424 = vmatpush3.msra.mxu1 %v866_v19 }
  0x67   : > { %1433 = vmatprep.subr.mxu1 %v1699_v0 }
 0x118   : > { %v356_v20 = vpop.f32.mrf.mxu0 }
 0x11a   : > { %v1392_v21 = vpop.f32.mrf.mxu0 }
 0x11c   : > { %v506_v22 = vpop.f32.mrf.mxu0 }
 0x11d   : > { %v432_v23 = vpop.f32.mrf.mxu1 }
 0x11e   : > { %v433_v24 = vadd.f32 %v432_v23, %v356_v20  ;;  %v1402_v25 = vpop.f32.mrf.mxu0 }
 0x11f   : > { %v1397_v26 = vpop.f32.mrf.mxu1 }
 0x120   : > { %v507_v27 = vadd.f32 %v506_v22, %v433_v24  ;;  %v654_v28 = vpop.f32.mrf.mxu0 }
 0x121   : > { %v580_v29 = vpop.f32.mrf.mxu1 }
 0x122   : > { %v581_v30 = vadd.f32 %v580_v29, %v507_v27  ;;  %v1412_v31 = vpop.f32.mrf.mxu0 }
 0x123   : > { %v1407_v32 = vpop.f32.mrf.mxu1 }
 0x124   : > { %v655_v33 = vadd.f32 %v654_v28, %v581_v30 }
 0x125   : > { %v726_v34 = vpop.f32.mrf.mxu1 }
 0x126   : > { %v727_v35 = vadd.f32 %v726_v34, %v655_v33 }
 0x127   : > { %v1417_v36 = vpop.f32.mrf.mxu1 }
 0x128   : > { %v731_v37 = vsel %vm730_vm1, %v727_v35, -inf }
 0x129   : > { %v732_v38 = vrot.slane %v731_v37, 4 }
 0x12b   : > { %v733_v39 = vmax.f32 %v731_v37, %v732_v38 }
 0x12d   : > { %v734_v40 = vrot.slane %v733_v39, 2 }
 0x12f   : > { %v735_v41 = vmax.f32 %v733_v39, %v734_v40 }
 0x131   : > { %v736_v42 = vrot.slane %v735_v41, 1 }
 0x133   : > { %v737_v43 = vmax.f32 %v735_v41, %v736_v42 }
 0x135   : > { %v738_v44 = vsub.f32 %v727_v35, %v737_v43 }
 0x137   : > { %v739_v45 = vmul.f32 1.442695, %v738_v44 }
 0x139   : > { %1522 = vpow2.f32 %v739_v45 }
 0x146   : > { %v1523_v46 = vpop.eup %1522 }
 0x147   : > { %v741_v47 = vsel %vm730_vm1, %v1523_v46, 0.0 }
 0x148   : > { %v742_v48 = vrot.slane %v741_v47, 4 }
 0x14a   : > { %v743_v49 = vadd.f32 %v742_v48, %v741_v47 }
 0x14c   : > { %v744_v50 = vrot.slane %v743_v49, 2 }
 0x14e   : > { %v745_v51 = vadd.f32 %v744_v50, %v743_v49 }
 0x150   : > { %v746_v52 = vrot.slane %v745_v51, 1 }
 0x152   : > { %v747_v53 = vadd.f32 %v746_v52, %v745_v51 }
 0x154   : > { %1524 = vrcp.f32 %v747_v53 }
 0x161   : > { %v1525_v54 = vpop.eup %1524 }
 0x162   : > { %v750_v55 = vmul.f32 %v1525_v54, %v1523_v46 }
 0x164   : > { %v753_v56 = vsel %vm730_vm1, %v750_v55, 0 }
 0x165   : > { %v821_v57 = vand.u32 4294901760, %v753_v56 }
 0x167   : > { %1426 = vmatmul.mubr.f32.vlgmr.msra.gmra.mxu1 %v821_v57  ;;  %v822_v58 = vsub.f32 %v753_v56, %v821_v57 }
 0x168   : > { %1434 = vmatpush3.msra.mxu1 %v786_v15  ;;  %1435 = vmatprep.mubr.msk.f32.mxu1 %vm1700_vm0, %v1699_v0 }
 0x169   : > { %v823_v59 = vand.u32 4294901760, %v822_v58  ;;  %1443 = vmatprep.subr.mxu1 %v1699_v0 }
 0x16b   : > { %1436 = vmatmul.mubr.f32.vlgmr.msra.gmra.mxu1 %v823_v59  ;;  %v824_v60 = vsub.f32 %v822_v58, %v823_v59 }
 0x16c   : > { %1444 = vmatpush3.msra.mxu1 %v786_v15  ;;  %1445 = vmatprep.mubr.msk.f32.mxu1 %vm1700_vm0, %v1699_v0 }
 0x16d   : > { %v825_v61 = vand.u32 4294901760, %v824_v60 }
 0x16f   : > { %1421 = vmatmul.mubr.f32.vlgmr.msra.gmra.mxu0 %v825_v61  ;;  %1446 = vmatmul.mubr.f32.vlgmr.msra.gmra.mxu1 %v821_v57 }
 0x170   : > { %1429 = vmatpush3.msra.mxu0 %v1903_v16  ;;  %1430 = vmatprep.mubr.msk.f32.mxu0 %vm1700_vm0, %v1699_v0 }
 0x171   : > { %1438 = vmatprep.subr.mxu0 %v1699_v0 }
 0x173   : > { %1431 = vmatmul.mubr.f32.vlgmr.msra.gmra.mxu0 %v822_v58 }
 0x174   : > { %1439 = vmatpush3.msra.mxu0 %v864_v17  ;;  %1440 = vmatprep.mubr.msk.f32.mxu0 %vm1700_vm0, %v1699_v0 }
 0x177   : > { %1441 = vmatmul.mubr.f32.vlgmr.msra.gmra.mxu0 %v821_v57 }
 0x227   : > { %v903_v62 = vpop.f32.mrf.mxu1 }
 0x229   : > { %v1427_v63 = vpop.f32.mrf.mxu1 }
 0x22b   : > { %v1051_v1 = vpop.f32.mrf.mxu1 }
 0x22d   : > { %v1437_v2 = vpop.f32.mrf.mxu1 }
 0x22f   : > { %v827_v3 = vpop.f32.mrf.mxu0  ;;  %v1197_v4 = vpop.f32.mrf.mxu1 }
 0x230   : > { %v904_v7 = vadd.f32 %v903_v62, %v827_v3 }
 0x231   : > { %v1422_v5 = vpop.f32.mrf.mxu0  ;;  %v1447_v6 = vpop.f32.mrf.mxu1 }
 0x233   : > { %v977_v8 = vpop.f32.mrf.mxu0 }
 0x234   : > { %v978_v9 = vadd.f32 %v977_v8, %v904_v7 }
 0x235   : > { %v1432_v10 = vpop.f32.mrf.mxu0 }
 0x236   : > { %v1052_v11 = vadd.f32 %v1051_v1, %v978_v9 }
 0x237   : > { %v1125_v12 = vpop.f32.mrf.mxu0 }
 0x238   : > { %v1126_v0 = vadd.f32 %v1125_v12, %v1052_v11 }
 0x239   : > { %v1442_v13 = vpop.f32.mrf.mxu0 }
 0x23a   : > { %v1198_v14 = vadd.f32 %v1197_v4, %v1126_v0 }
 0x23c   : > { %1207 = vst [vmem:[%s274_s5] sm:$0xff] %v1198_v14 }
 0x23d   : > { %1623 = shalt.err (!%p1620_p12)
}
 0x23e   : > { %s1624_s20 = scalar_lea.hbm %s1220_s7, 128  ;;  %s1628_s21 = scalar_lea.hbm %s1967_s3, 256 }
 0x23f   : > { %p1625_p1 = scmp.ne.s32.totalorder %s1220_s7, %s1624_s20  ;;  %p1629_p6 = scmp.lt.s32.totalorder %s1220_s7, %s1967_s3 }
 0x240   : > { %p1630_p7 = scmp.lt.s32.totalorder %s1628_s21, %s1624_s20 }
 0x241   : > { %p1626_p2 = pnand %p1625_p1, %p1777_p9 }
 0x242   : > { %p1631_p8 = por %p1630_p7, %p1629_p6 }
 0x243   : > { %p1627_p5 = pneg %p1626_p2 }
 0x245   : > { %p1632_p0 = pnand %p1631_p8, %p1627_p5 }
 0x247   : > { %1635 = shalt.err (!%p1632_p0)
}
 0x248   : > { %1454 = dma.vmem_to_hbm [thread:$0]  (%p1777_p9), %s1223_s10, 128, %s1220_s7, %s1209_s19  }
 0x249 PF: > { %s1234_s28 = sand.u32 1, %s1674_s12   ;;  %p1982_p3 = scmp.ge.s32.totalorder %s1694_s17, 2 }
 0x24a   : > { %s1235_s30 = scalar_lea.sflag [#allocation5], %s1234_s28 }
 0x24b   : > { %p1467_p4 = pnand %p1982_p3, %p1784_p11 }
 0x24d   : > { %p1468_p10 = pneg %p1467_p4 }
 0x24f   : > { %1669 = dma.done.wait (%p1468_p10), %s1235_s30, 128  }
 0x250   : > { %1671 = vsyncadd (%p1468_p10), %s1235_s30, 4294967168  ;;  %s22_s17 = sadd.s32 1, %s1694_s17   ;;  %s1983_s15 = sld [smem:[#allocation13_spill]] }
 0x251   : > { %p19_p13 = scmp.ge.s32.totalorder %s22_s17, 4   ;;  %s1984_s16 = sld [smem:[#allocation14_spill]] }
 0x252   : > { %s1985_s12 = smov %s1678_s13  ;;  %s1986_s13 = smov %s1682_s14 }
 0x253   : > { %s1987_s14 = smov %s1782_s26  ;;  %21 = sbr.rel (!%p19_p13) target bundleno = 10 (0xa), region = 109 }
 0x258   :  { %1240 = vsyncpa [#allocation4], 1 }
 0x259   :  { %1242 = vsyncpa [#allocation4 + $0x1], 1 }
 0x25a   :  { %1243 = vsyncpa [#allocation7], 1 }
 0x25b   :  { %1245 = vsyncpa [#allocation7 + $0x1], 1 }
 0x25c   :  { %1246 = vsyncpa [#allocation5], 1 }
 0x25d   :  { %1248 = vsyncpa [#allocation5 + $0x1], 1 }

</bundles_post_ra>
